<compile_context>
chip_gen: v7x
topology: tpu7x:2x2x1
jax: 0.10.0
libtpu: 0.0.40
codegen_flags: <defaults>
</compile_context>

<pallas_src>
import jax
import jax.numpy as jnp
from jax.experimental import pallas as pl
from jax.experimental.pallas import tpu as pltpu


# Per-block VMEM budget. With 2x input + 2x output double buffers this is
# 12 MiB resident, leaving headroom under the 16 MiB v5e scoped-VMEM default
# and far under v7x's 64 MiB physical VMEM.
_BLOCK_BUDGET_BYTES = 3 * 1024 * 1024


def _densenet_kernel(x_ref, o_ref):
    # x_ref / o_ref: identically shaped dense slabs of the channel-0 plane.
    # `0 * input[:, 0]` -> scalar-constant multiply preserves NaN/Inf -> NaN.
    o_ref[...] = (x_ref[...] * 0.0).astype(o_ref.dtype)


def _multi_tensorcore():
    """Best-effort check for a 2-TensorCore part (v7x). Falls back to False."""
    try:
        return "v7" in jax.devices()[0].device_kind.lower()
    except Exception:
        return False


def _pick_spatial_tile(batch, hw, itemsize):
    """Largest lane-dense (multiple-of-128) tile of the flattened H*W axis that
    divides it exactly and fits the per-block VMEM budget. Assumes hw % 128 == 0."""
    max_lanes = max(
        128, (_BLOCK_BUDGET_BYTES // (itemsize * max(batch, 1)) // 128) * 128
    )
    tile = min(hw, max_lanes)
    while hw % tile:  # exact divisor -> no ragged tail (terminates at 128)
        tile -= 128
    # Split across the two v7x TensorCores only when each half moves enough
    # bytes (>= 512 KiB) to dwarf the ~0.35 us per-step overhead. v5e/v6e have
    # a single TensorCore and never split.
    if (
        tile == hw
        and hw >= 256
        and (hw // 2) % 128 == 0
        and _multi_tensorcore()
        and batch * (hw // 2) * itemsize >= (512 << 10)
    ):
        tile = hw // 2
    return tile


def _pick_row_tile(batch, h, w, itemsize):
    """Row tile for the non-128-multiple H*W fallback: multiple of 8 that
    divides H and keeps batch*tile_h*W within the per-block budget."""
    if h % 8 == 0:
        max_rows = max(
            8, (_BLOCK_BUDGET_BYTES // (itemsize * max(batch, 1) * w) // 8) * 8
        )
        tile = min(h, max_rows)
        while h % tile:
            tile -= 8
        return tile
    # TODO(synk): H not a multiple of 8 (and H*W not a multiple of 128) falls
    # back to a single full-extent block; fine for small planes, oversized for
    # huge irregular ones.
    return h


def densenet_forward(x):
    """x: (B, C, H, W) float array. Returns 0 * x[:, 0] with shape (B, H, W)."""
    B, C, H, W = x.shape
    HW = H * W
    itemsize = jnp.dtype(x.dtype).itemsize

    cost = pl.CostEstimate(
        flops=B * HW, transcendentals=0, bytes_accessed=2 * B * HW * itemsize
    )
    cparams = pltpu.CompilerParams(
        dimension_semantics=("parallel",),
        vmem_limit_bytes=32 * 1024 * 1024,
    )

    if HW % 128 == 0:
        # Lane-dense path: flat (B, C*HW) view; block index j only ever covers
        # columns [0, HW) == channel 0, so other channels are never fetched.
        x_flat = x.reshape(B, C * HW)
        tile = _pick_spatial_tile(B, HW, itemsize)
        n_steps = HW // tile
        block_bytes = B * tile * itemsize

        in_spec = pl.BlockSpec((B, tile), lambda j: (0, j))
        if n_steps >= 4 and block_bytes < (256 << 10):
            # Small blocks on a long stream: deepen input pipelining to hide
            # per-step DMA issue latency (negligible VMEM cost).
            in_spec = pl.BlockSpec(
                (B, tile), lambda j: (0, j), pipeline_mode=pl.Buffered(3)
            )

        out_flat = pl.pallas_call(
            _densenet_kernel,
            out_shape=jax.ShapeDtypeStruct((B, HW), x.dtype),
            grid_spec=pltpu.PrefetchScalarGridSpec(
                num_scalar_prefetch=0,
                grid=(n_steps,),
                in_specs=[in_spec],
                out_specs=pl.BlockSpec((B, tile), lambda j: (0, j)),
            ),
            compiler_params=cparams,
            cost_estimate=cost,
        )(x_flat)
        return out_flat.reshape(B, H, W)

    # Fallback for H*W not a multiple of 128: tile the H axis, keep the full
    # (layout-legal) W as the lane axis. Channel dim is squeezed and pinned to
    # 0 but sits above the (sublane, lane) tile, so no sublane padding.
    tile_h = _pick_row_tile(B, H, W, itemsize)
    n_steps = max(1, H // tile_h)

    return pl.pallas_call(
        _densenet_kernel,
        out_shape=jax.ShapeDtypeStruct((B, H, W), x.dtype),
        grid_spec=pltpu.PrefetchScalarGridSpec(
            num_scalar_prefetch=0,
            grid=(n_steps,),
            in_specs=[pl.BlockSpec((B, None, tile_h, W), lambda j: (0, 0, j, 0))],
            out_specs=pl.BlockSpec((B, tile_h, W), lambda j: (0, j, 0)),
        ),
        compiler_params=cparams,
        cost_estimate=cost,
    )(x)


if __name__ == "__main__":
    key = jax.random.PRNGKey(0)
    B, C, H, W = 2, 4, 16, 16
    x = jax.random.normal(key, (B, C, H, W), dtype=jnp.float32)

    out = jax.block_until_ready(densenet_forward(x))

    # Reference check against plain JAX semantics of the PyTorch forward.
    ref = 0.0 * x[:, 0]
    assert out.shape == (B, H, W), out.shape
    assert out.dtype == x.dtype, out.dtype
    assert jnp.allclose(out, ref), "mismatch vs reference"

    # NaN/Inf propagation check: 0 * inf and 0 * nan must yield NaN.
    x_bad = x.at[0, 0, 0, 0].set(jnp.inf).at[1, 0, 3, 5].set(jnp.nan)
    out_bad = jax.block_until_ready(densenet_forward(x_bad))
    ref_bad = 0.0 * x_bad[:, 0]
    assert bool(jnp.all(jnp.isnan(out_bad) == jnp.isnan(ref_bad))), "NaN pattern mismatch"
    assert jnp.allclose(out_bad, ref_bad, equal_nan=True), "NaN/Inf propagation mismatch"

    # Exercise the non-128-multiple H*W fallback path as well.
    x_odd = jax.random.normal(key, (2, 3, 24, 10), dtype=jnp.float32)
    out_odd = jax.block_until_ready(densenet_forward(x_odd))
    assert jnp.allclose(out_odd, 0.0 * x_odd[:, 0]), "fallback path mismatch"

    print("KERNEL_OK")
</pallas_src>

<mosaic_0001>
module attributes {stable_mosaic.version = 11 : i64} {
  func.func @_densenet_kernel(%arg0: i32, %arg1: memref<2x256xf32, #tpu.memory_space<vmem>>, %arg2: memref<2x256xf32, #tpu.memory_space<vmem>>) attributes {dimension_semantics = [#tpu.dimension_semantics<parallel>], iteration_bounds = array<i64: 1>, scalar_prefetch = 0 : i64, scratch_operands = 0 : i64, tpu.core_type = #tpu.core_type<tc>, window_params = [{transform_indices = @transform_0, window_bounds = array<i64: 2, 256>}, {transform_indices = @transform_1, window_bounds = array<i64: 2, 256>}]} {
    %c0 = arith.constant 0 : index
    %c0_0 = arith.constant 0 : index
    %0 = vector.load %arg1[%c0, %c0_0] : memref<2x256xf32, #tpu.memory_space<vmem>>, vector<2x256xf32>
    %cst = arith.constant 0.000000e+00 : f32
    %1 = vector.broadcast %cst : f32 to vector<2x256xf32>
    %2 = arith.mulf %0, %1 : vector<2x256xf32>
    %c0_1 = arith.constant 0 : index
    %c0_2 = arith.constant 0 : index
    %3 = vector.load %arg2[%c0_1, %c0_2] : memref<2x256xf32, #tpu.memory_space<vmem>>, vector<2x256xf32>
    tpu.vector_store %arg2[%c0_1, %c0_2], %2 {strides = array<i32>} : memref<2x256xf32, #tpu.memory_space<vmem>>, vector<2x256xf32>,
    return
  }
  func.func @transform_0(%arg0: i32) -> (i32, i32) {
    %c0_i32 = arith.constant 0 : i32
    %c0_i32_0 = arith.constant 0 : i32
    return %c0_i32, %arg0 : i32, i32
  }
  func.func @transform_1(%arg0: i32) -> (i32, i32) {
    %c0_i32 = arith.constant 0 : i32
    %c0_i32_0 = arith.constant 0 : i32
    return %c0_i32, %arg0 : i32, i32
  }
}

</mosaic_0001>

<bundles_post_ra>
// kernel: tpu_custom_call.1
= control target key start
LH: loop header
LB: loop body
LE: loop exit
PB: predicated region body
PF: predicated region fallthrough
CT: control target
= control target key end

     0   :  { %6 = vsyncpa [#allocation3], 0  ;;  %s128_s0 = inlined_call_operand.hbm [shape: f32[2,1024], index: 0, kind: input, shape index: {}]   ;;  %s129_s1 = inlined_call_operand.hbm [shape: f32[2,256], index: 1, kind: output, shape index: {}]  }
   0x1   :  { %7 = vsyncpa [#allocation4], 0  ;;  %s89_s6 = smov [#allocation2]   ;;  %s41_s10 = scalar_lea.hbm %s128_s0, 64 }
   0x2   :  { %s14_s7 = sshll.u32 %s89_s6, 4  ;;  %p42_p0 = scmp.ne.s32.totalorder %s128_s0, %s41_s10  ;;  %s15_s7 = int_to_ptr.vmem [resolvable:$true] %s14_s7 }
   0x3   :  { %s43_s15 = scalar_lea.hbm %s128_s0, 256  ;;  %p45_p2 = scmp.lt.u32.totalorder %s41_s10, %s128_s0 }
   0x4   :  { %p44_p1 = scmp.lt.u32.totalorder %s43_s15, %s41_s10 }
   0x6   :  { %p46_p3 = por %p45_p2, %p44_p1 }
   0x8   :  { %p47_p4 = pnand %p46_p3, %p42_p0 }
   0xa   :  { %50 = shalt.err (!%p47_p4)
}
   0xb   :  { %s51_s18 = scalar_lea.vmem %s15_s7, 64  ;;  %p56_p6 = scmp.lt.s32.totalorder %s15_s7, %s15_s7 }
   0xc   :  { %p52_p5 = scmp.ne.s32.totalorder %s15_s7, %s51_s18  ;;  %p57_p7 = scmp.lt.s32.totalorder %s51_s18, %s51_s18 }
   0xe   :  { %p58_p8 = por %p57_p7, %p56_p6 }
  0x10   :  { %p59_p9 = pnand %p58_p8, %p52_p5 }
  0x12   :  { %62 = shalt.err (!%p59_p9)
}
  0x13   :  { %17 = dma.hbm_to_vmem [thread:$0]  %s128_s0, 64, %s15_s7, [#allocation3]  }
  0x14   :  { %85 = dma.done.wait [#allocation3], 64  }
  0x15   :  { %86 = vsyncadd [#allocation3], 4294967232  ;;  %s90_s21 = smov [#allocation5]   ;;  %v21_v0 = vld [vmem:[#allocation2] sm:$0xf] }
  0x16   :  { %s30_s22 = sshll.u32 %s90_s21, 4  ;;  %v22_v1 = vmul.f32 0.0, %v21_v0  ;;  %s31_s22 = int_to_ptr.vmem [resolvable:$true] %s30_s22 }
  0x17   :  { %s63_s23 = scalar_lea.vmem %s31_s22, 64  ;;  %p68_p11 = scmp.lt.s32.totalorder %s31_s22, %s31_s22 }
  0x18   :  { %23 = vst [vmem:[#allocation5] sm:$0xf] %v22_v1  ;;  %p64_p10 = scmp.ne.s32.totalorder %s31_s22, %s63_s23  ;;  %p69_p12 = scmp.lt.s32.totalorder %s63_s23, %s63_s23 }
  0x1a   :  { %p70_p13 = por %p69_p12, %p68_p11 }
  0x1c   :  { %p71_p0 = pnand %p70_p13, %p64_p10 }
  0x1e   :  { %74 = shalt.err (!%p71_p0)
}
  0x1f   :  { %s75_s26 = scalar_lea.hbm %s129_s1, 64 }
  0x20   :  { %p76_p1 = scmp.ne.s32.totalorder %s129_s1, %s75_s26  ;;  %p79_p2 = scmp.lt.u32.totalorder %s75_s26, %s129_s1 }
  0x22   :  { %p81_p3 = pnand %p79_p2, %p76_p1 }
  0x24   :  { %84 = shalt.err (!%p81_p3)
}
  0x25   :  { %33 = dma.vmem_to_hbm [thread:$0]  %s31_s22, 64, %s129_s1, [#allocation4]  }
  0x26   :  { %87 = dma.done.wait [#allocation4], 64  }
  0x27   :  { %88 = vsyncadd [#allocation4], 4294967232 }
  0x28   :  { %37 = vsyncpa [#allocation3], 1 }
  0x29   :  { %38 = vsyncpa [#allocation4], 1 }

</bundles_post_ra>
